<compile_context>
chip_gen: v6e
topology: v6e:2x2x1
jax: 0.10.0
libtpu: 0.0.40
codegen_flags: <defaults>
</compile_context>

<pallas_src>
import jax
import jax.numpy as jnp
from jax import lax
from jax.experimental import pallas as pl
from jax.experimental.pallas import tpu as pltpu

# Module hyper-parameters (from the reference script)
HIDDEN_DIM = 32
LAG_FEAT_LEN = 10
INPUT_DIM = LAG_FEAT_LEN
LAYER_DIM = 1
PRED_LEN = 10
OUTPUT_DIM = PRED_LEN

LANES = 128  # 4 * HIDDEN_DIM == one full vreg lane width


def _slab_offsets(H, D):
    """Static row offsets of each parameter inside the packed (R,128) slab."""
    G = 4 * H
    r_whh = 0              # (G, G)   padded hidden->gates weight
    r_wlin = r_whh + G     # (G, 128) padded final-linear weight
    r_wih = r_wlin + G     # (D, G)   input->gates weight (transposed)
    r_bias = r_wih + D     # (1, G)   combined LSTM bias (b_ih + b_hh)
    r_blin = r_bias + 1    # (1, 128) final-linear bias (zero-padded lanes)
    rows = r_blin + 1
    return r_whh, r_wlin, r_wih, r_bias, r_blin, rows


def make_lstm_kernel(B, T, H, D, O):
    """Build a kernel specialized for static (batch B, seq len T, hidden H)."""
    G = 4 * H
    assert G == LANES, "kernel is specialized for 4*H == 128 lanes"
    R_WHH, R_WLIN, R_WIH, R_BIAS, R_BLIN, _ = _slab_offsets(H, D)

    def lstm_kernel(x_ref, slab_ref, out_ref, xp_ref):
        # x_ref    : (T*B, D)    time-major flattened input
        # slab_ref : (Rpad, 128) packed parameter slab (single DMA)
        # out_ref  : (B, O)      output
        # xp_ref   : (T*B, 4H)   VMEM scratch: hoisted input projection

        whh = slab_ref[R_WHH:R_WHH + G, :]          # (4H, 4H), rows [H,2H) real
        wih = slab_ref[R_WIH:R_WIH + D, :]          # (D, 4H)
        bias = slab_ref[R_BIAS:R_BIAS + 1, :]       # (1, 4H)

        # --- hoisted input projection: one MXU matmul, bias folded in -------
        xp_ref[...] = (
            jnp.dot(x_ref[...], wih, preferred_element_type=jnp.float32) + bias
        )

        # Gate order along the 4H lane axis is [i, f, g, o] (PyTorch order).
        lane = lax.broadcasted_iota(jnp.int32, (B, G), 1)
        g_mask = (lane >= 2 * H) & (lane < 3 * H)
        # sigmoid(x) = 0.5*tanh(0.5*x) + 0.5  -> one tanh for the whole vreg.
        half = jnp.where(g_mask, jnp.float32(1.0), jnp.float32(0.5))
        offs = jnp.where(g_mask, jnp.float32(0.0), jnp.float32(0.5))

        # h kept FULL width (B,4H): valid lanes are the f-block [H,2H); the
        # zero rows of whh/wlin kill the other (bounded don't-care) lanes.
        h = jnp.zeros((B, G), jnp.float32)
        # c likewise full width, valid at the f-block lanes.
        c = jnp.zeros((B, G), jnp.float32)

        # T is small and static -> full unroll (bounded vreg pressure).
        for t in range(T):
            # Contiguous rows of the hoisted projection for this time step.
            xg = xp_ref[pl.ds(t * B, B), :]                          # (B, 4H)
            gates = xg + jnp.dot(h, whh, preferred_element_type=jnp.float32)

            # Single whole-vreg tanh; non-g lanes fixed up to sigmoid via FMA.
            t_all = jnp.tanh(gates * half)
            act = t_all * half + offs

            # c (valid at lanes [H,2H)):  f*c + i*g.  Rolling by H and 3H
            # aligns the i and g blocks onto the f block; the product is
            # commutative so the roll direction convention does not matter.
            c = act * c + pltpu.roll(act, H, 1) * pltpu.roll(act, 3 * H, 1)
            # h = o*tanh(c): rolling by 2H (self-symmetric mod 4H) brings o
            # onto the f block, aligned with c.  No lane slice needed.
            h = pltpu.roll(act, 2 * H, 1) * jnp.tanh(c)

        # Final Linear on the last hidden state (zero-padded weight rows make
        # the garbage lanes of h irrelevant).
        wlin = slab_ref[R_WLIN:R_WLIN + G, :]        # (4H, 128), cols [0,O) real
        blin = slab_ref[R_BLIN:R_BLIN + 1, :]        # (1, 128),  cols [0,O) real
        out_full = jnp.dot(h, wlin, preferred_element_type=jnp.float32) + blin
        out_ref[...] = out_full[:, :O]

    return lstm_kernel


def lstm_model_forward(x, slab):
    """x: (B, T, D) float32 (PyTorch batch_first layout). Returns (B, OUTPUT_DIM)."""
    B, T, D = x.shape
    H = HIDDEN_DIM
    O = OUTPUT_DIM
    # Tiny time-major transpose in the wrapper so every per-step fetch inside
    # the kernel is a contiguous aligned slice.
    x_tm = jnp.transpose(x, (1, 0, 2)).reshape(T * B, D)

    kernel = make_lstm_kernel(B, T, H, D, O)
    return pl.pallas_call(
        kernel,
        out_shape=jax.ShapeDtypeStruct((B, O), jnp.float32),
        in_specs=[pl.BlockSpec(memory_space=pltpu.MemorySpace.VMEM)] * 2,
        out_specs=pl.BlockSpec(memory_space=pltpu.MemorySpace.VMEM),
        scratch_shapes=[pltpu.VMEM((T * B, 4 * H), jnp.float32)],
    )(x_tm, slab)


def init_raw_params(key, input_dim=INPUT_DIM, hidden_dim=HIDDEN_DIM,
                    output_dim=OUTPUT_DIM):
    """PyTorch-layout params with U(-1/sqrt(H), 1/sqrt(H)) init."""
    k = 1.0 / jnp.sqrt(jnp.float32(hidden_dim))
    ks = jax.random.split(key, 6)
    w_ih = jax.random.uniform(ks[0], (4 * hidden_dim, input_dim), jnp.float32, -k, k)
    w_hh = jax.random.uniform(ks[1], (4 * hidden_dim, hidden_dim), jnp.float32, -k, k)
    b_ih = jax.random.uniform(ks[2], (4 * hidden_dim,), jnp.float32, -k, k)
    b_hh = jax.random.uniform(ks[3], (4 * hidden_dim,), jnp.float32, -k, k)
    w_lin = jax.random.uniform(ks[4], (output_dim, hidden_dim), jnp.float32, -k, k)
    b_lin = jax.random.uniform(ks[5], (output_dim,), jnp.float32, -k, k)
    return (w_ih, w_hh, b_ih, b_hh, w_lin, b_lin)


def pack_params(w_ih, w_hh, b_ih, b_hh, w_lin, b_lin):
    """Pack all parameters into one contiguous (Rpad, 128) f32 slab (1 DMA)."""
    H = HIDDEN_DIM
    G = 4 * H
    D = w_ih.shape[1]
    O = w_lin.shape[0]
    assert G == LANES

    # Hidden->gates weight, transposed and zero-padded to (4H, 4H): only rows
    # [H, 2H) (the lanes where the live h sits) are non-zero.
    whh_pad = jnp.zeros((G, G), jnp.float32).at[H:2 * H, :].set(w_hh.T)
    # Final Linear weight, transposed, placed at rows [H, 2H), cols [0, O).
    wlin_pad = jnp.zeros((G, LANES), jnp.float32).at[H:2 * H, :O].set(w_lin.T)
    wih_t = w_ih.T.astype(jnp.float32)                       # (D, 4H)
    bias = (b_ih + b_hh).reshape(1, G).astype(jnp.float32)   # (1, 4H)
    blin_row = jnp.zeros((1, LANES), jnp.float32).at[0, :O].set(b_lin)

    slab = jnp.concatenate([whh_pad, wlin_pad, wih_t, bias, blin_row], axis=0)
    rows = slab.shape[0]
    rows_pad = ((rows + 7) // 8) * 8
    return jnp.pad(slab, ((0, rows_pad - rows), (0, 0)))


def reference_forward(x, raw):
    """Pure-JAX reference of the PyTorch forward (for correctness check)."""
    w_ih, w_hh, b_ih, b_hh, w_lin, b_lin = raw
    B, T, D = x.shape
    H = HIDDEN_DIM
    h = jnp.zeros((B, H), jnp.float32)
    c = jnp.zeros((B, H), jnp.float32)
    for t in range(T):
        gates = x[:, t, :] @ w_ih.T + b_ih + h @ w_hh.T + b_hh
        i = jax.nn.sigmoid(gates[:, 0:H])
        f = jax.nn.sigmoid(gates[:, H:2 * H])
        g = jnp.tanh(gates[:, 2 * H:3 * H])
        o = jax.nn.sigmoid(gates[:, 3 * H:4 * H])
        c = f * c + i * g
        h = o * jnp.tanh(c)
    return h @ w_lin.T + b_lin


if __name__ == "__main__":
    key = jax.random.PRNGKey(0)
    k_x, k_p = jax.random.split(key)

    B, T, D = 2, 8, INPUT_DIM  # batch=2, seq=8, features=10
    x = jax.random.normal(k_x, (B, T, D), jnp.float32)
    raw = init_raw_params(k_p)
    slab = pack_params(*raw)

    fwd = jax.jit(lstm_model_forward)
    out = fwd(x, slab)
    out = jax.block_until_ready(out)

    ref = reference_forward(x, raw)
    assert out.shape == (B, OUTPUT_DIM)
    assert jnp.allclose(out, ref, atol=1e-4, rtol=1e-4), "mismatch vs reference"

    print("KERNEL_OK")
</pallas_src>

<mosaic_0001>
module attributes {stable_mosaic.version = 11 : i64} {
  func.func @lstm_kernel(%arg0: memref<16x10xf32, #tpu.memory_space<vmem>>, %arg1: memref<272x128xf32, #tpu.memory_space<vmem>>, %arg2: memref<2x10xf32, #tpu.memory_space<vmem>>, %arg3: memref<16x128xf32, #tpu.memory_space<vmem>>) attributes {dimension_semantics = [], scalar_prefetch = 0 : i64, scratch_operands = 1 : i64, tpu.core_type = #tpu.core_type<tc>} {
    %c0 = arith.constant 0 : index
    %c0_0 = arith.constant 0 : index
    %0 = vector.load %arg1[%c0, %c0_0] : memref<272x128xf32, #tpu.memory_space<vmem>>, vector<128x128xf32>
    %c256 = arith.constant 256 : index
    %c0_1 = arith.constant 0 : index
    %1 = vector.load %arg1[%c256, %c0_1] : memref<272x128xf32, #tpu.memory_space<vmem>>, vector<10x128xf32>
    %c266 = arith.constant 266 : index
    %c0_2 = arith.constant 0 : index
    %2 = vector.load %arg1[%c266, %c0_2] : memref<272x128xf32, #tpu.memory_space<vmem>>, vector<1x128xf32>
    %c0_3 = arith.constant 0 : index
    %c0_4 = arith.constant 0 : index
    %3 = vector.load %arg0[%c0_3, %c0_4] : memref<16x10xf32, #tpu.memory_space<vmem>>, vector<16x10xf32>
    %cst = arith.constant dense<0.000000e+00> : vector<16x128xf32>
    %4 = tpu.matmul %3, %1, %cst {dimension_numbers = #tpu.dot_dimension_numbers<[1], [0], [0], [1], [0, 0, 1, 1], [], []>} : vector<16x10xf32>, vector<10x128xf32>, vector<16x128xf32> -> vector<16x128xf32>
    %5 = vector.broadcast %2 : vector<1x128xf32> to vector<16x128xf32>
    %6 = arith.addf %4, %5 : vector<16x128xf32>
    %c0_5 = arith.constant 0 : index
    %c0_6 = arith.constant 0 : index
    %7 = vector.load %arg3[%c0_5, %c0_6] : memref<16x128xf32, #tpu.memory_space<vmem>>, vector<16x128xf32>
    tpu.vector_store %arg3[%c0_5, %c0_6], %6 {strides = array<i32>} : memref<16x128xf32, #tpu.memory_space<vmem>>, vector<16x128xf32>,
    %8 = tpu.iota {dimensions = array<i32: 1>} : vector<2x128xi32>
    %c64_i32 = arith.constant 64 : i32
    %9 = vector.broadcast %c64_i32 : i32 to vector<2x128xi32>
    %10 = arith.cmpi sge, %8, %9 : vector<2x128xi32>
    %c96_i32 = arith.constant 96 : i32
    %11 = vector.broadcast %c96_i32 : i32 to vector<2x128xi32>
    %12 = arith.cmpi slt, %8, %11 : vector<2x128xi32>
    %13 = arith.andi %10, %12 : vector<2x128xi1>
    %cst_7 = arith.constant 1.000000e+00 : f32
    %cst_8 = arith.constant 5.000000e-01 : f32
    %14 = vector.broadcast %cst_7 : f32 to vector<2x128xf32>
    %15 = vector.broadcast %cst_8 : f32 to vector<2x128xf32>
    %16 = arith.select %13, %14, %15 : vector<2x128xi1>, vector<2x128xf32>
    %cst_9 = arith.constant 0.000000e+00 : f32
    %cst_10 = arith.constant 5.000000e-01 : f32
    %17 = vector.broadcast %cst_9 : f32 to vector<2x128xf32>
    %18 = vector.broadcast %cst_10 : f32 to vector<2x128xf32>
    %19 = arith.select %13, %17, %18 : vector<2x128xi1>, vector<2x128xf32>
    %cst_11 = arith.constant 0.000000e+00 : f32
    %20 = vector.broadcast %cst_11 : f32 to vector<2x128xf32>
    %cst_12 = arith.constant 0.000000e+00 : f32
    %21 = vector.broadcast %cst_12 : f32 to vector<2x128xf32>
    %c0_13 = arith.constant 0 : index
    %c0_14 = arith.constant 0 : index
    %22 = vector.load %arg3[%c0_13, %c0_14] : memref<16x128xf32, #tpu.memory_space<vmem>>, vector<2x128xf32>
    %cst_15 = arith.constant dense<0.000000e+00> : vector<2x128xf32>
    %23 = tpu.matmul %20, %0, %cst_15 {dimension_numbers = #tpu.dot_dimension_numbers<[1], [0], [0], [1], [0, 0, 1, 1], [], []>} : vector<2x128xf32>, vector<128x128xf32>, vector<2x128xf32> -> vector<2x128xf32>
    %24 = arith.addf %22, %23 : vector<2x128xf32>
    %25 = arith.mulf %24, %16 : vector<2x128xf32>
    %26 = math.tanh %25 : vector<2x128xf32>
    %27 = arith.mulf %26, %16 : vector<2x128xf32>
    %28 = arith.addf %27, %19 : vector<2x128xf32>
    %29 = arith.mulf %28, %21 : vector<2x128xf32>
    %c32_i32 = arith.constant 32 : i32
    %30 = tpu.dynamic_rotate %28 by %c32_i32 dim 1 : vector<2x128xf32>, i32 -> vector<2x128xf32>
    %c96_i32_16 = arith.constant 96 : i32
    %31 = tpu.dynamic_rotate %28 by %c96_i32_16 dim 1 : vector<2x128xf32>, i32 -> vector<2x128xf32>
    %32 = arith.mulf %30, %31 : vector<2x128xf32>
    %33 = arith.addf %29, %32 : vector<2x128xf32>
    %c64_i32_17 = arith.constant 64 : i32
    %34 = tpu.dynamic_rotate %28 by %c64_i32_17 dim 1 : vector<2x128xf32>, i32 -> vector<2x128xf32>
    %35 = math.tanh %33 : vector<2x128xf32>
    %36 = arith.mulf %34, %35 : vector<2x128xf32>
    %c2 = arith.constant 2 : index
    %c0_18 = arith.constant 0 : index
    %37 = vector.load %arg3[%c2, %c0_18] : memref<16x128xf32, #tpu.memory_space<vmem>>, vector<2x128xf32>
    %cst_19 = arith.constant dense<0.000000e+00> : vector<2x128xf32>
    %38 = tpu.matmul %36, %0, %cst_19 {dimension_numbers = #tpu.dot_dimension_numbers<[1], [0], [0], [1], [0, 0, 1, 1], [], []>} : vector<2x128xf32>, vector<128x128xf32>, vector<2x128xf32> -> vector<2x128xf32>
    %39 = arith.addf %37, %38 : vector<2x128xf32>
    %40 = arith.mulf %39, %16 : vector<2x128xf32>
    %41 = math.tanh %40 : vector<2x128xf32>
    %42 = arith.mulf %41, %16 : vector<2x128xf32>
    %43 = arith.addf %42, %19 : vector<2x128xf32>
    %44 = arith.mulf %43, %33 : vector<2x128xf32>
    %c32_i32_20 = arith.constant 32 : i32
    %45 = tpu.dynamic_rotate %43 by %c32_i32_20 dim 1 : vector<2x128xf32>, i32 -> vector<2x128xf32>
    %c96_i32_21 = arith.constant 96 : i32
    %46 = tpu.dynamic_rotate %43 by %c96_i32_21 dim 1 : vector<2x128xf32>, i32 -> vector<2x128xf32>
    %47 = arith.mulf %45, %46 : vector<2x128xf32>
    %48 = arith.addf %44, %47 : vector<2x128xf32>
    %c64_i32_22 = arith.constant 64 : i32
    %49 = tpu.dynamic_rotate %43 by %c64_i32_22 dim 1 : vector<2x128xf32>, i32 -> vector<2x128xf32>
    %50 = math.tanh %48 : vector<2x128xf32>
    %51 = arith.mulf %49, %50 : vector<2x128xf32>
    %c4 = arith.constant 4 : index
    %c0_23 = arith.constant 0 : index
    %52 = vector.load %arg3[%c4, %c0_23] : memref<16x128xf32, #tpu.memory_space<vmem>>, vector<2x128xf32>
    %cst_24 = arith.constant dense<0.000000e+00> : vector<2x128xf32>
    %53 = tpu.matmul %51, %0, %cst_24 {dimension_numbers = #tpu.dot_dimension_numbers<[1], [0], [0], [1], [0, 0, 1, 1], [], []>} : vector<2x128xf32>, vector<128x128xf32>, vector<2x128xf32> -> vector<2x128xf32>
    %54 = arith.addf %52, %53 : vector<2x128xf32>
    %55 = arith.mulf %54, %16 : vector<2x128xf32>
    %56 = math.tanh %55 : vector<2x128xf32>
    %57 = arith.mulf %56, %16 : vector<2x128xf32>
    %58 = arith.addf %57, %19 : vector<2x128xf32>
    %59 = arith.mulf %58, %48 : vector<2x128xf32>
    %c32_i32_25 = arith.constant 32 : i32
    %60 = tpu.dynamic_rotate %58 by %c32_i32_25 dim 1 : vector<2x128xf32>, i32 -> vector<2x128xf32>
    %c96_i32_26 = arith.constant 96 : i32
    %61 = tpu.dynamic_rotate %58 by %c96_i32_26 dim 1 : vector<2x128xf32>, i32 -> vector<2x128xf32>
    %62 = arith.mulf %60, %61 : vector<2x128xf32>
    %63 = arith.addf %59, %62 : vector<2x128xf32>
    %c64_i32_27 = arith.constant 64 : i32
    %64 = tpu.dynamic_rotate %58 by %c64_i32_27 dim 1 : vector<2x128xf32>, i32 -> vector<2x128xf32>
    %65 = math.tanh %63 : vector<2x128xf32>
    %66 = arith.mulf %64, %65 : vector<2x128xf32>
    %c6 = arith.constant 6 : index
    %c0_28 = arith.constant 0 : index
    %67 = vector.load %arg3[%c6, %c0_28] : memref<16x128xf32, #tpu.memory_space<vmem>>, vector<2x128xf32>
    %cst_29 = arith.constant dense<0.000000e+00> : vector<2x128xf32>
    %68 = tpu.matmul %66, %0, %cst_29 {dimension_numbers = #tpu.dot_dimension_numbers<[1], [0], [0], [1], [0, 0, 1, 1], [], []>} : vector<2x128xf32>, vector<128x128xf32>, vector<2x128xf32> -> vector<2x128xf32>
    %69 = arith.addf %67, %68 : vector<2x128xf32>
    %70 = arith.mulf %69, %16 : vector<2x128xf32>
    %71 = math.tanh %70 : vector<2x128xf32>
    %72 = arith.mulf %71, %16 : vector<2x128xf32>
    %73 = arith.addf %72, %19 : vector<2x128xf32>
    %74 = arith.mulf %73, %63 : vector<2x128xf32>
    %c32_i32_30 = arith.constant 32 : i32
    %75 = tpu.dynamic_rotate %73 by %c32_i32_30 dim 1 : vector<2x128xf32>, i32 -> vector<2x128xf32>
    %c96_i32_31 = arith.constant 96 : i32
    %76 = tpu.dynamic_rotate %73 by %c96_i32_31 dim 1 : vector<2x128xf32>, i32 -> vector<2x128xf32>
    %77 = arith.mulf %75, %76 : vector<2x128xf32>
    %78 = arith.addf %74, %77 : vector<2x128xf32>
    %c64_i32_32 = arith.constant 64 : i32
    %79 = tpu.dynamic_rotate %73 by %c64_i32_32 dim 1 : vector<2x128xf32>, i32 -> vector<2x128xf32>
    %80 = math.tanh %78 : vector<2x128xf32>
    %81 = arith.mulf %79, %80 : vector<2x128xf32>
    %c8 = arith.constant 8 : index
    %c0_33 = arith.constant 0 : index
    %82 = vector.load %arg3[%c8, %c0_33] : memref<16x128xf32, #tpu.memory_space<vmem>>, vector<2x128xf32>
    %cst_34 = arith.constant dense<0.000000e+00> : vector<2x128xf32>
    %83 = tpu.matmul %81, %0, %cst_34 {dimension_numbers = #tpu.dot_dimension_numbers<[1], [0], [0], [1], [0, 0, 1, 1], [], []>} : vector<2x128xf32>, vector<128x128xf32>, vector<2x128xf32> -> vector<2x128xf32>
    %84 = arith.addf %82, %83 : vector<2x128xf32>
    %85 = arith.mulf %84, %16 : vector<2x128xf32>
    %86 = math.tanh %85 : vector<2x128xf32>
    %87 = arith.mulf %86, %16 : vector<2x128xf32>
    %88 = arith.addf %87, %19 : vector<2x128xf32>
    %89 = arith.mulf %88, %78 : vector<2x128xf32>
    %c32_i32_35 = arith.constant 32 : i32
    %90 = tpu.dynamic_rotate %88 by %c32_i32_35 dim 1 : vector<2x128xf32>, i32 -> vector<2x128xf32>
    %c96_i32_36 = arith.constant 96 : i32
    %91 = tpu.dynamic_rotate %88 by %c96_i32_36 dim 1 : vector<2x128xf32>, i32 -> vector<2x128xf32>
    %92 = arith.mulf %90, %91 : vector<2x128xf32>
    %93 = arith.addf %89, %92 : vector<2x128xf32>
    %c64_i32_37 = arith.constant 64 : i32
    %94 = tpu.dynamic_rotate %88 by %c64_i32_37 dim 1 : vector<2x128xf32>, i32 -> vector<2x128xf32>
    %95 = math.tanh %93 : vector<2x128xf32>
    %96 = arith.mulf %94, %95 : vector<2x128xf32>
    %c10 = arith.constant 10 : index
    %c0_38 = arith.constant 0 : index
    %97 = vector.load %arg3[%c10, %c0_38] : memref<16x128xf32, #tpu.memory_space<vmem>>, vector<2x128xf32>
    %cst_39 = arith.constant dense<0.000000e+00> : vector<2x128xf32>
    %98 = tpu.matmul %96, %0, %cst_39 {dimension_numbers = #tpu.dot_dimension_numbers<[1], [0], [0], [1], [0, 0, 1, 1], [], []>} : vector<2x128xf32>, vector<128x128xf32>, vector<2x128xf32> -> vector<2x128xf32>
    %99 = arith.addf %97, %98 : vector<2x128xf32>
    %100 = arith.mulf %99, %16 : vector<2x128xf32>
    %101 = math.tanh %100 : vector<2x128xf32>
    %102 = arith.mulf %101, %16 : vector<2x128xf32>
    %103 = arith.addf %102, %19 : vector<2x128xf32>
    %104 = arith.mulf %103, %93 : vector<2x128xf32>
    %c32_i32_40 = arith.constant 32 : i32
    %105 = tpu.dynamic_rotate %103 by %c32_i32_40 dim 1 : vector<2x128xf32>, i32 -> vector<2x128xf32>
    %c96_i32_41 = arith.constant 96 : i32
    %106 = tpu.dynamic_rotate %103 by %c96_i32_41 dim 1 : vector<2x128xf32>, i32 -> vector<2x128xf32>
    %107 = arith.mulf %105, %106 : vector<2x128xf32>
    %108 = arith.addf %104, %107 : vector<2x128xf32>
    %c64_i32_42 = arith.constant 64 : i32
    %109 = tpu.dynamic_rotate %103 by %c64_i32_42 dim 1 : vector<2x128xf32>, i32 -> vector<2x128xf32>
    %110 = math.tanh %108 : vector<2x128xf32>
    %111 = arith.mulf %109, %110 : vector<2x128xf32>
    %c12 = arith.constant 12 : index
    %c0_43 = arith.constant 0 : index
    %112 = vector.load %arg3[%c12, %c0_43] : memref<16x128xf32, #tpu.memory_space<vmem>>, vector<2x128xf32>
    %cst_44 = arith.constant dense<0.000000e+00> : vector<2x128xf32>
    %113 = tpu.matmul %111, %0, %cst_44 {dimension_numbers = #tpu.dot_dimension_numbers<[1], [0], [0], [1], [0, 0, 1, 1], [], []>} : vector<2x128xf32>, vector<128x128xf32>, vector<2x128xf32> -> vector<2x128xf32>
    %114 = arith.addf %112, %113 : vector<2x128xf32>
    %115 = arith.mulf %114, %16 : vector<2x128xf32>
    %116 = math.tanh %115 : vector<2x128xf32>
    %117 = arith.mulf %116, %16 : vector<2x128xf32>
    %118 = arith.addf %117, %19 : vector<2x128xf32>
    %119 = arith.mulf %118, %108 : vector<2x128xf32>
    %c32_i32_45 = arith.constant 32 : i32
    %120 = tpu.dynamic_rotate %118 by %c32_i32_45 dim 1 : vector<2x128xf32>, i32 -> vector<2x128xf32>
    %c96_i32_46 = arith.constant 96 : i32
    %121 = tpu.dynamic_rotate %118 by %c96_i32_46 dim 1 : vector<2x128xf32>, i32 -> vector<2x128xf32>
    %122 = arith.mulf %120, %121 : vector<2x128xf32>
    %123 = arith.addf %119, %122 : vector<2x128xf32>
    %c64_i32_47 = arith.constant 64 : i32
    %124 = tpu.dynamic_rotate %118 by %c64_i32_47 dim 1 : vector<2x128xf32>, i32 -> vector<2x128xf32>
    %125 = math.tanh %123 : vector<2x128xf32>
    %126 = arith.mulf %124, %125 : vector<2x128xf32>
    %c14 = arith.constant 14 : index
    %c0_48 = arith.constant 0 : index
    %127 = vector.load %arg3[%c14, %c0_48] : memref<16x128xf32, #tpu.memory_space<vmem>>, vector<2x128xf32>
    %cst_49 = arith.constant dense<0.000000e+00> : vector<2x128xf32>
    %128 = tpu.matmul %126, %0, %cst_49 {dimension_numbers = #tpu.dot_dimension_numbers<[1], [0], [0], [1], [0, 0, 1, 1], [], []>} : vector<2x128xf32>, vector<128x128xf32>, vector<2x128xf32> -> vector<2x128xf32>
    %129 = arith.addf %127, %128 : vector<2x128xf32>
    %130 = arith.mulf %129, %16 : vector<2x128xf32>
    %131 = math.tanh %130 : vector<2x128xf32>
    %132 = arith.mulf %131, %16 : vector<2x128xf32>
    %133 = arith.addf %132, %19 : vector<2x128xf32>
    %134 = arith.mulf %133, %123 : vector<2x128xf32>
    %c32_i32_50 = arith.constant 32 : i32
    %135 = tpu.dynamic_rotate %133 by %c32_i32_50 dim 1 : vector<2x128xf32>, i32 -> vector<2x128xf32>
    %c96_i32_51 = arith.constant 96 : i32
    %136 = tpu.dynamic_rotate %133 by %c96_i32_51 dim 1 : vector<2x128xf32>, i32 -> vector<2x128xf32>
    %137 = arith.mulf %135, %136 : vector<2x128xf32>
    %138 = arith.addf %134, %137 : vector<2x128xf32>
    %c64_i32_52 = arith.constant 64 : i32
    %139 = tpu.dynamic_rotate %133 by %c64_i32_52 dim 1 : vector<2x128xf32>, i32 -> vector<2x128xf32>
    %140 = math.tanh %138 : vector<2x128xf32>
    %141 = arith.mulf %139, %140 : vector<2x128xf32>
    %c128 = arith.constant 128 : index
    %c0_53 = arith.constant 0 : index
    %142 = vector.load %arg1[%c128, %c0_53] : memref<272x128xf32, #tpu.memory_space<vmem>>, vector<128x128xf32>
    %c267 = arith.constant 267 : index
    %c0_54 = arith.constant 0 : index
    %143 = vector.load %arg1[%c267, %c0_54] : memref<272x128xf32, #tpu.memory_space<vmem>>, vector<1x128xf32>
    %cst_55 = arith.constant dense<0.000000e+00> : vector<2x128xf32>
    %144 = tpu.matmul %141, %142, %cst_55 {dimension_numbers = #tpu.dot_dimension_numbers<[1], [0], [0], [1], [0, 0, 1, 1], [], []>} : vector<2x128xf32>, vector<128x128xf32>, vector<2x128xf32> -> vector<2x128xf32>
    %145 = vector.broadcast %143 : vector<1x128xf32> to vector<2x128xf32>
    %146 = arith.addf %144, %145 : vector<2x128xf32>
    %147 = vector.extract_strided_slice %146 {offsets = [0, 0], sizes = [2, 10], strides = [1, 1]} : vector<2x128xf32> to vector<2x10xf32>
    %c0_56 = arith.constant 0 : index
    %c0_57 = arith.constant 0 : index
    %148 = vector.load %arg2[%c0_56, %c0_57] : memref<2x10xf32, #tpu.memory_space<vmem>>, vector<2x10xf32>
    tpu.vector_store %arg2[%c0_56, %c0_57], %147 {strides = array<i32>} : memref<2x10xf32, #tpu.memory_space<vmem>>, vector<2x10xf32>,
    return
  }
}

</mosaic_0001>

<bundles_post_ra>
// kernel: lstm_model_forward.1
= control target key start
LH: loop header
LB: loop body
LE: loop exit
PB: predicated region body
PF: predicated region fallthrough
CT: control target
= control target key end

     0   :  { %7 = vsyncpa [#allocation4], 0  ;;  %s1936_s0 = inlined_call_operand.vmem [shape: f32[16,10], index: 0, kind: input, shape index: {}]   ;;  %s1937_s1 = inlined_call_operand.hbm [shape: f32[272,128], index: 1, kind: input, shape index: {}]   ;;  %s1938_s2 = inlined_call_operand.hbm [shape: f32[2,10], index: 2, kind: output, shape index: {}]  }
   0x1   :  { %8 = vsyncpa [#allocation5], 0  ;;  %s1520_s9 = smov [#allocation3]  }
   0x2   :  { %s16_s10 = sshll.u32 %s1520_s9, 4  ;;  %s17_s10 = int_to_ptr.vmem [resolvable:$true] %s16_s10 }
   0x3   :  { %s1484_s11 = scalar_lea.vmem %s17_s10, 4352  ;;  %p1489_p1 = scmp.lt.s32.totalorder %s17_s10, %s17_s10 }
   0x4   :  { %p1485_p0 = scmp.ne.s32.totalorder %s17_s10, %s1484_s11  ;;  %p1490_p2 = scmp.lt.s32.totalorder %s1484_s11, %s1484_s11 }
   0x6   :  { %p1491_p3 = por %p1490_p2, %p1489_p1 }
   0x8   :  { %p1492_p4 = pnand %p1491_p3, %p1485_p0 }
   0xa   :  { %1495 = shalt.err (!%p1492_p4)
}
   0xb   :  { %s1521_s12 = smov 128   ;;  %s1522_s13 = smov 8  }
   0xc   :  { %22 = dma.hbm_to_vmem [thread:$0]  %s1937_s1, 4352, %s17_s10, [#allocation4], %s1521_s12, %s1521_s12, %s1522_s13  }
   0xd   :  { %1516 = dma.done.wait [#allocation4], 4352  }
   0xe   :  { %1517 = vsyncadd [#allocation4], 4294962944  ;;  %v1523_v0 = vmov 0.0   ;;  %vm1524_vm0 = vmmov 0   ;;  %v1551_v1 = vld [vmem:[#allocation3 + $0x78] sm:$0xff]  ;;  %v1553_v2 = vld [vmem:[#allocation3 + $0x70] sm:$0xff]  ;;  %v139_v26 = vlaneseq }
   0xf   :  { %1119 = vmatprep.subr.mxu1 %v1523_v0  ;;  %1151 = vmatprep.mubr.msk.f32.mxu1 %vm1524_vm0, %v1523_v0  ;;  %vm58_vm1 = vcmask 1041408   ;;  %v1557_v3 = vld [vmem:[#allocation3 + $0x68] sm:$0xff]  ;;  %v42_v5 = vld [vmem:[#allocation3 + $0x100] sm:$0xff]  ;;  %v45_v7 = vld [vmem:[%s1936_s0] sm:$0xff]  ;;  %vm51_vm2 = vcmask 80896   ;;  %v1525_v28 = vmov 0.5  }
  0x10   :  { %1120 = vmatpush3.msra.mxu1 %v1551_v1  ;;  %v43_v4 = vld [vmem:[#allocation3 + $0x108] sm:$0x3]  ;;  %v1561_v6 = vld [vmem:[#allocation3 + $0x60] sm:$0xff]  ;;  %v46_v8 = vld [vmem:[%s1936_s0 + $0x8] sm:$0xff]  ;;  %1116 = vmatprep.mubr.msk.f32.mxu0 %vm51_vm2, %v45_v7  ;;  %v140_v27 = vand.u32 127, %v139_v26  ;;  %s1526_s0 = smov 64  }
  0x11   :  { %1121 = vmatprep.subr.mxu1 %v1523_v0  ;;  %1112 = vmatprep.subr.msk.mxu0 %vm58_vm1, %v43_v4  ;;  %v1571_v9 = vld [vmem:[#allocation3 + $0x58] sm:$0xff]  ;;  %v1575_v10 = vld [vmem:[#allocation3 + $0x50] sm:$0xff]  ;;  %v1580_v11 = vld [vmem:[#allocation3 + $0x48] sm:$0xff]  ;;  %s1527_s19 = smov 32   ;;  %s1528_s20 = smov 96   ;;  %vm933_vm6 = vcmask 74752  }
  0x12   :  { %1122 = vmatpush3.msra.mxu1 %v1553_v2  ;;  %1113 = vmatpush3.msk.msra.mxu0 %vm58_vm1, %v43_v4  ;;  %v1586_v12 = vld [vmem:[#allocation3 + $0x40] sm:$0xff]  ;;  %v1592_v13 = vld [vmem:[#allocation3 + $0x38] sm:$0xff]  ;;  %v1598_v14 = vld [vmem:[#allocation3 + $0x30] sm:$0xff]  ;;  %vm141_vm3 = vcmp.ge.s32.totalorder %v140_v27, 64  ;;  %vm142_vm4 = vcmp.lt.s32.totalorder %v140_v27, 96  ;;  %s1529_s21 = smov [#allocation6]  }
  0x13   :  { %1123 = vmatprep.subr.mxu1 %v1523_v0  ;;  %1114 = vmatprep.subr.mxu0 %v42_v5  ;;  %v1604_v15 = vld [vmem:[#allocation3 + $0x28] sm:$0xff]  ;;  %v1610_v16 = vld [vmem:[#allocation3 + $0x20] sm:$0xff]  ;;  %v1616_v17 = vld [vmem:[#allocation3 + $0x18] sm:$0xff]  ;;  %s941_s22 = sshll.u32 %s1529_s21, 4  ;;  %s942_s22 = int_to_ptr.vmem [resolvable:$true] %s941_s22 }
  0x14   :  { %1124 = vmatpush3.msra.mxu1 %v1557_v3  ;;  %1115 = vmatpush3.msra.mxu0 %v42_v5  ;;  %v1622_v18 = vld [vmem:[#allocation3 + $0x10] sm:$0xff]  ;;  %v1628_v19 = vld [vmem:[#allocation3 + $0x8] sm:$0xff]  ;;  %v1634_v20 = vld [vmem:[#allocation3] sm:$0xff]  ;;  %s1496_s23 = scalar_lea.vmem %s942_s22, 32  ;;  %p1501_p6 = scmp.lt.s32.totalorder %s942_s22, %s942_s22 }
  0x15   :  { %1125 = vmatprep.subr.mxu1 %v1523_v0  ;;  %1117 = vmatmul.mubr.msk.f32.vlgmr.msra.gmra.mxu0 %vm51_vm2, %v46_v8  ;;  %v950_v21 = vld [vmem:[#allocation3 + $0x10a] ss:$0 sm:$0xff]  ;;  %vm143_vm5 = vmand %vm141_vm3, %vm142_vm4  ;;  %p1497_p5 = scmp.ne.s32.totalorder %s942_s22, %s1496_s23  ;;  %p1502_p7 = scmp.lt.s32.totalorder %s1496_s23, %s1496_s23 }
  0x16   :  { %1126 = vmatpush3.msra.mxu1 %v1561_v6  ;;  %1154 = vmatprep.subr.mxu0 %v1523_v0  ;;  %v1691_v29 = vsel %vm143_vm5, 1.0, %v1525_v28  ;;  %v1694_v36 = vsel %vm143_vm5, 0.0, %v1525_v28 }
  0x17   :  { %1127 = vmatprep.subr.mxu1 %v1523_v0  ;;  %1155 = vmatpush3.msra.mxu0 %v1551_v1  ;;  %p1503_p8 = por %p1502_p7, %p1501_p6 }
  0x18   :  { %1128 = vmatpush3.msra.mxu1 %v1571_v9  ;;  %1156 = vmatprep.subr.mxu0 %v1523_v0 }
  0x19   :  { %1129 = vmatprep.subr.mxu1 %v1523_v0  ;;  %1157 = vmatpush3.msra.mxu0 %v1553_v2  ;;  %p1504_p9 = pnand %p1503_p8, %p1497_p5 }
  0x1a   :  { %1130 = vmatpush3.msra.mxu1 %v1575_v10  ;;  %1158 = vmatprep.subr.mxu0 %v1523_v0 }
  0x1b   :  { %1131 = vmatprep.subr.mxu1 %v1523_v0  ;;  %1159 = vmatpush3.msra.mxu0 %v1557_v3 }
  0x1c   :  { %1132 = vmatpush3.msra.mxu1 %v1580_v11  ;;  %1160 = vmatprep.subr.mxu0 %v1523_v0 }
  0x1d   :  { %1133 = vmatprep.subr.mxu1 %v1523_v0  ;;  %1161 = vmatpush3.msra.mxu0 %v1561_v6 }
  0x1e   :  { %1134 = vmatpush3.msra.mxu1 %v1586_v12  ;;  %1162 = vmatprep.subr.mxu0 %v1523_v0 }
  0x1f   :  { %1135 = vmatprep.subr.mxu1 %v1523_v0  ;;  %1163 = vmatpush3.msra.mxu0 %v1571_v9 }
  0x20   :  { %1136 = vmatpush3.msra.mxu1 %v1592_v13  ;;  %1164 = vmatprep.subr.mxu0 %v1523_v0 }
  0x21   :  { %1137 = vmatprep.subr.mxu1 %v1523_v0  ;;  %1165 = vmatpush3.msra.mxu0 %v1575_v10 }
  0x22   :  { %1138 = vmatpush3.msra.mxu1 %v1598_v14  ;;  %1166 = vmatprep.subr.mxu0 %v1523_v0 }
  0x23   :  { %1139 = vmatprep.subr.mxu1 %v1523_v0  ;;  %1167 = vmatpush3.msra.mxu0 %v1580_v11 }
  0x24   :  { %1140 = vmatpush3.msra.mxu1 %v1604_v15  ;;  %1168 = vmatprep.subr.mxu0 %v1523_v0 }
  0x25   :  { %1141 = vmatprep.subr.mxu1 %v1523_v0  ;;  %1169 = vmatpush3.msra.mxu0 %v1586_v12 }
  0x26   :  { %1142 = vmatpush3.msra.mxu1 %v1610_v16  ;;  %1170 = vmatprep.subr.mxu0 %v1523_v0 }
  0x27   :  { %1143 = vmatprep.subr.mxu1 %v1523_v0  ;;  %1171 = vmatpush3.msra.mxu0 %v1592_v13 }
  0x28   :  { %1144 = vmatpush3.msra.mxu1 %v1616_v17  ;;  %1172 = vmatprep.subr.mxu0 %v1523_v0 }
  0x29   :  { %1145 = vmatprep.subr.mxu1 %v1523_v0  ;;  %1173 = vmatpush3.msra.mxu0 %v1598_v14 }
  0x2a   :  { %1146 = vmatpush3.msra.mxu1 %v1622_v18  ;;  %1174 = vmatprep.subr.mxu0 %v1523_v0 }
  0x2b   :  { %1147 = vmatprep.subr.mxu1 %v1523_v0  ;;  %1175 = vmatpush3.msra.mxu0 %v1604_v15 }
  0x2c   :  { %1148 = vmatpush3.msra.mxu1 %v1628_v19  ;;  %1176 = vmatprep.subr.mxu0 %v1523_v0 }
  0x2d   :  { %1149 = vmatprep.subr.mxu1 %v1523_v0  ;;  %1177 = vmatpush3.msra.mxu0 %v1610_v16 }
  0x2e   :  { %1150 = vmatpush3.msra.mxu1 %v1634_v20  ;;  %1178 = vmatprep.subr.mxu0 %v1523_v0 }
  0x2f   :  { %1152 = vmatmul.mubr.f32.vlgmr.msra.gmra.mxu1 %v1523_v0  ;;  %1186 = vmatprep.mubr.msk.f32.mxu0 %vm1524_vm0, %v1523_v0 }
  0x30   :  { %1179 = vmatpush3.msra.mxu0 %v1616_v17  ;;  %1189 = vmatprep.subr.mxu1 %v1523_v0 }
  0x31   :  { %1180 = vmatprep.subr.mxu0 %v1523_v0  ;;  %1190 = vmatpush3.msra.mxu1 %v1551_v1 }
  0x32   :  { %1181 = vmatpush3.msra.mxu0 %v1622_v18  ;;  %1191 = vmatprep.subr.mxu1 %v1523_v0 }
  0x33   :  { %1182 = vmatprep.subr.mxu0 %v1523_v0  ;;  %1192 = vmatpush3.msra.mxu1 %v1553_v2 }
  0x34   :  { %1183 = vmatpush3.msra.mxu0 %v1628_v19  ;;  %1193 = vmatprep.subr.mxu1 %v1523_v0 }
  0x35   :  { %1184 = vmatprep.subr.mxu0 %v1523_v0  ;;  %1194 = vmatpush3.msra.mxu1 %v1557_v3 }
  0x36   :  { %1185 = vmatpush3.msra.mxu0 %v1634_v20  ;;  %1195 = vmatprep.subr.mxu1 %v1523_v0 }
  0x37   :  { %1196 = vmatpush3.msra.mxu1 %v1561_v6  ;;  %1221 = vmatprep.mubr.msk.f32.mxu1 %vm1524_vm0, %v1523_v0 }
  0x38   :  { %1197 = vmatprep.subr.mxu1 %v1523_v0  ;;  %1224 = vmatprep.subr.mxu0 %v1523_v0 }
  0x39   :  { %1198 = vmatpush3.msra.mxu1 %v1571_v9 }
  0x3a   :  { %1199 = vmatprep.subr.mxu1 %v1523_v0 }
  0x3b   :  { %1200 = vmatpush3.msra.mxu1 %v1575_v10 }
  0x3c   :  { %1201 = vmatprep.subr.mxu1 %v1523_v0 }
  0x3d   :  { %1202 = vmatpush3.msra.mxu1 %v1580_v11 }
  0x3e   :  { %1203 = vmatprep.subr.mxu1 %v1523_v0 }
  0x3f   :  { %1204 = vmatpush3.msra.mxu1 %v1586_v12 }
  0x40   :  { %1205 = vmatprep.subr.mxu1 %v1523_v0 }
  0x41   :  { %1206 = vmatpush3.msra.mxu1 %v1592_v13 }
  0x42   :  { %1207 = vmatprep.subr.mxu1 %v1523_v0 }
  0x43   :  { %1208 = vmatpush3.msra.mxu1 %v1598_v14 }
  0x44   :  { %1209 = vmatprep.subr.mxu1 %v1523_v0 }
  0x45   :  { %1210 = vmatpush3.msra.mxu1 %v1604_v15 }
  0x46   :  { %1211 = vmatprep.subr.mxu1 %v1523_v0 }
  0x47   :  { %1212 = vmatpush3.msra.mxu1 %v1610_v16 }
  0x48   :  { %1213 = vmatprep.subr.mxu1 %v1523_v0 }
  0x49   :  { %1214 = vmatpush3.msra.mxu1 %v1616_v17 }
  0x4a   :  { %1215 = vmatprep.subr.mxu1 %v1523_v0 }
  0x4b   :  { %1216 = vmatpush3.msra.mxu1 %v1622_v18 }
  0x4c   :  { %1217 = vmatprep.subr.mxu1 %v1523_v0 }
  0x4d   :  { %1218 = vmatpush3.msra.mxu1 %v1628_v19 }
  0x4e   :  { %1219 = vmatprep.subr.mxu1 %v1523_v0 }
  0x4f   :  { %1220 = vmatpush3.msra.mxu1 %v1634_v20 }
  0x50   :  { %1259 = vmatprep.subr.mxu1 %v1523_v0 }
  0xd5   :  { %v1118_v22 = vpop.f32.mrf.mxu0 }
  0xd6   :  { %v134_v23 = vadd.f32 %v1118_v22, %v950_v21 }
  0xd7   :  { %v128_v24 = vpop.f32.mrf.mxu0 }
  0xd8   :  { %138 = vst [vmem:[#allocation2 + $0x8] sm:$0xff] %v134_v23  ;;  %v129_v25 = vadd.f32 %v950_v21, %v128_v24 }
  0xda   :  { %137 = vst [vmem:[#allocation2] sm:$0xff] %v129_v25 }
  0xe1   :  { %v146_v30 = vld [vmem:[#allocation2] sm:$0x3]  ;;  %v233_v47 = vld [vmem:[#allocation2 + $0x2] sm:$0x3]  ;;  %v320_v63 = vld [vmem:[#allocation2 + $0x4] sm:$0x3] }
  0xef   :  { %v213_v31 = vpop.f32.mrf.mxu1 }
  0xf0   :  { %v217_v32 = vadd.f32 %v213_v31, %v146_v30 }
  0xf1   :  { %v1153_v33 = vpop.f32.mrf.mxu1 }
  0xf2   :  { %v218_v34 = vmul.f32 %v217_v32, %v1691_v29  ;;  %v407_v33 = vld [vmem:[#allocation2 + $0x6] sm:$0x3] }
  0xf4   :  { %1444 = vtanh.f32 %v218_v34 }
 0x101   :  { %v1445_v35 = vpop.eup %1444 }
 0x102   :  { %v220_v37 = vmul.f32 %v1445_v35, %v1691_v29 }
 0x104   :  { %v221_v38 = vadd.f32 %v220_v37, %v1694_v36 }
 0x106   :  { %229 = vrot.lane.b32.xlu1 %v221_v38, %s1526_s0  ;;  %223 = vrot.lane.b32.xlu0 %v221_v38, %s1527_s19  ;;  %v222_v41 = vmul.f32 0.0, %v221_v38 }
 0x10a   :  { %225 = vrot.lane.b32.xlu0 %v221_v38, %s1528_s20 }
 0x178   :  { %v224_v39 = vpop.permute.xlu0 %223  ;;  %v230_v45 = vpop.permute.xlu1 %229 }
 0x17c   :  { %v226_v40 = vpop.permute.xlu0 %225 }
 0x17d   :  { %v227_v42 = vmul.f32 %v226_v40, %v224_v39 }
 0x17f   :  { %v228_v43 = vadd.f32 %v227_v42, %v222_v41 }
 0x181   :  { %1446 = vtanh.f32 %v228_v43 }
 0x18e   :  { %v1447_v44 = vpop.eup %1446 }
 0x18f   :  { %v232_v46 = vmul.f32 %v1447_v44, %v230_v45 }
 0x191   :  { %1187 = vmatmul.mubr.f32.vlgmr.msra.gmra.mxu0 %v232_v46 }
 0x192   :  { %1225 = vmatpush3.msra.mxu0 %v1551_v1  ;;  %1256 = vmatprep.mubr.msk.f32.mxu0 %vm1524_vm0, %v1523_v0 }
 0x193   :  { %1226 = vmatprep.subr.mxu0 %v1523_v0 }
 0x194   :  { %1227 = vmatpush3.msra.mxu0 %v1553_v2 }
 0x195   :  { %1228 = vmatprep.subr.mxu0 %v1523_v0 }
 0x196   :  { %1229 = vmatpush3.msra.mxu0 %v1557_v3 }
 0x197   :  { %1230 = vmatprep.subr.mxu0 %v1523_v0 }
 0x198   :  { %1231 = vmatpush3.msra.mxu0 %v1561_v6 }
 0x199   :  { %1232 = vmatprep.subr.mxu0 %v1523_v0 }
 0x19a   :  { %1233 = vmatpush3.msra.mxu0 %v1571_v9 }
 0x19b   :  { %1234 = vmatprep.subr.mxu0 %v1523_v0 }
 0x19c   :  { %1235 = vmatpush3.msra.mxu0 %v1575_v10 }
 0x19d   :  { %1236 = vmatprep.subr.mxu0 %v1523_v0 }
 0x19e   :  { %1237 = vmatpush3.msra.mxu0 %v1580_v11 }
 0x19f   :  { %1238 = vmatprep.subr.mxu0 %v1523_v0 }
 0x1a0   :  { %1239 = vmatpush3.msra.mxu0 %v1586_v12 }
 0x1a1   :  { %1240 = vmatprep.subr.mxu0 %v1523_v0 }
 0x1a2   :  { %1241 = vmatpush3.msra.mxu0 %v1592_v13 }
 0x1a3   :  { %1242 = vmatprep.subr.mxu0 %v1523_v0 }
 0x1a4   :  { %1243 = vmatpush3.msra.mxu0 %v1598_v14 }
 0x1a5   :  { %1244 = vmatprep.subr.mxu0 %v1523_v0 }
 0x1a6   :  { %1245 = vmatpush3.msra.mxu0 %v1604_v15 }
 0x1a7   :  { %1246 = vmatprep.subr.mxu0 %v1523_v0 }
 0x1a8   :  { %1247 = vmatpush3.msra.mxu0 %v1610_v16 }
 0x1a9   :  { %1248 = vmatprep.subr.mxu0 %v1523_v0 }
 0x1aa   :  { %1249 = vmatpush3.msra.mxu0 %v1616_v17 }
 0x1ab   :  { %1250 = vmatprep.subr.mxu0 %v1523_v0 }
 0x1ac   :  { %1251 = vmatpush3.msra.mxu0 %v1622_v18 }
 0x1ad   :  { %1252 = vmatprep.subr.mxu0 %v1523_v0 }
 0x1ae   :  { %1253 = vmatpush3.msra.mxu0 %v1628_v19 }
 0x1af   :  { %1254 = vmatprep.subr.mxu0 %v1523_v0 }
 0x1b0   :  { %1255 = vmatpush3.msra.mxu0 %v1634_v20 }
 0x1b1   :  { %1294 = vmatprep.subr.mxu0 %v1523_v0 }
 0x251   :  { %v300_v48 = vpop.f32.mrf.mxu0 }
 0x252   :  { %v304_v49 = vadd.f32 %v300_v48, %v233_v47 }
 0x253   :  { %v1188_v50 = vpop.f32.mrf.mxu0 }
 0x254   :  { %v305_v51 = vmul.f32 %v304_v49, %v1691_v29  ;;  %v494_v50 = vld [vmem:[#allocation2 + $0x8] sm:$0x3] }
 0x256   :  { %1448 = vtanh.f32 %v305_v51 }
 0x263   :  { %v1449_v52 = vpop.eup %1448 }
 0x264   :  { %v307_v53 = vmul.f32 %v1449_v52, %v1691_v29 }
 0x266   :  { %v308_v54 = vadd.f32 %v307_v53, %v1694_v36 }
 0x268   :  { %312 = vrot.lane.b32.xlu0 %v308_v54, %s1528_s20  ;;  %310 = vrot.lane.b32.xlu1 %v308_v54, %s1527_s19  ;;  %v309_v57 = vmul.f32 %v308_v54, %v228_v43 }
 0x26c   :  { %316 = vrot.lane.b32.xlu1 %v308_v54, %s1526_s0 }
 0x2da   :  { %v313_v55 = vpop.permute.xlu0 %312  ;;  %v311_v56 = vpop.permute.xlu1 %310 }
 0x2db   :  { %v314_v58 = vmul.f32 %v313_v55, %v311_v56 }
 0x2dd   :  { %v315_v59 = vadd.f32 %v314_v58, %v309_v57 }
 0x2de   :  { %v317_v61 = vpop.permute.xlu1 %316 }
 0x2df   :  { %1450 = vtanh.f32 %v315_v59 }
 0x2ec   :  { %v1451_v60 = vpop.eup %1450 }
 0x2ed   :  { %v319_v62 = vmul.f32 %v1451_v60, %v317_v61 }
 0x2ef   :  { %1222 = vmatmul.mubr.f32.vlgmr.msra.gmra.mxu1 %v319_v62 }
 0x2f0   :  { %1260 = vmatpush3.msra.mxu1 %v1551_v1  ;;  %1291 = vmatprep.mubr.msk.f32.mxu1 %vm1524_vm0, %v1523_v0 }
 0x2f1   :  { %1261 = vmatprep.subr.mxu1 %v1523_v0 }
 0x2f2   :  { %1262 = vmatpush3.msra.mxu1 %v1553_v2 }
 0x2f3   :  { %1263 = vmatprep.subr.mxu1 %v1523_v0 }
 0x2f4   :  { %1264 = vmatpush3.msra.mxu1 %v1557_v3 }
 0x2f5   :  { %1265 = vmatprep.subr.mxu1 %v1523_v0 }
 0x2f6   :  { %1266 = vmatpush3.msra.mxu1 %v1561_v6 }
 0x2f7   :  { %1267 = vmatprep.subr.mxu1 %v1523_v0 }
 0x2f8   :  { %1268 = vmatpush3.msra.mxu1 %v1571_v9 }
 0x2f9   :  { %1269 = vmatprep.subr.mxu1 %v1523_v0 }
 0x2fa   :  { %1270 = vmatpush3.msra.mxu1 %v1575_v10 }
 0x2fb   :  { %1271 = vmatprep.subr.mxu1 %v1523_v0 }
 0x2fc   :  { %1272 = vmatpush3.msra.mxu1 %v1580_v11 }
 0x2fd   :  { %1273 = vmatprep.subr.mxu1 %v1523_v0 }
 0x2fe   :  { %1274 = vmatpush3.msra.mxu1 %v1586_v12 }
 0x2ff   :  { %1275 = vmatprep.subr.mxu1 %v1523_v0 }
 0x300   :  { %1276 = vmatpush3.msra.mxu1 %v1592_v13 }
 0x301   :  { %1277 = vmatprep.subr.mxu1 %v1523_v0 }
 0x302   :  { %1278 = vmatpush3.msra.mxu1 %v1598_v14 }
 0x303   :  { %1279 = vmatprep.subr.mxu1 %v1523_v0 }
 0x304   :  { %1280 = vmatpush3.msra.mxu1 %v1604_v15 }
 0x305   :  { %1281 = vmatprep.subr.mxu1 %v1523_v0 }
 0x306   :  { %1282 = vmatpush3.msra.mxu1 %v1610_v16 }
 0x307   :  { %1283 = vmatprep.subr.mxu1 %v1523_v0 }
 0x308   :  { %1284 = vmatpush3.msra.mxu1 %v1616_v17 }
 0x309   :  { %1285 = vmatprep.subr.mxu1 %v1523_v0 }
 0x30a   :  { %1286 = vmatpush3.msra.mxu1 %v1622_v18 }
 0x30b   :  { %1287 = vmatprep.subr.mxu1 %v1523_v0 }
 0x30c   :  { %1288 = vmatpush3.msra.mxu1 %v1628_v19 }
 0x30d   :  { %1289 = vmatprep.subr.mxu1 %v1523_v0 }
 0x30e   :  { %1290 = vmatpush3.msra.mxu1 %v1634_v20 }
 0x30f   :  { %1329 = vmatprep.subr.mxu1 %v1523_v0 }
 0x3af   :  { %v387_v4 = vpop.f32.mrf.mxu1 }
 0x3b0   :  { %v391_v5 = vadd.f32 %v387_v4, %v320_v63 }
 0x3b1   :  { %v1223_v7 = vpop.f32.mrf.mxu1 }
 0x3b2   :  { %v392_v8 = vmul.f32 %v391_v5, %v1691_v29  ;;  %v668_v7 = vld [vmem:[#allocation2 + $0xc] sm:$0x3] }
 0x3b4   :  { %1452 = vtanh.f32 %v392_v8 }
 0x3c1   :  { %v1453_v21 = vpop.eup %1452 }
 0x3c2   :  { %v394_v22 = vmul.f32 %v1453_v21, %v1691_v29 }
 0x3c4   :  { %v395_v23 = vadd.f32 %v394_v22, %v1694_v36 }
 0x3c6   :  { %399 = vrot.lane.b32.xlu1 %v395_v23, %s1528_s20  ;;  %397 = vrot.lane.b32.xlu0 %v395_v23, %s1527_s19  ;;  %v396_v26 = vmul.f32 %v395_v23, %v315_v59 }
 0x3ca   :  { %403 = vrot.lane.b32.xlu0 %v395_v23, %s1526_s0 }
 0x438   :  { %v400_v24 = vpop.permute.xlu1 %399  ;;  %v398_v25 = vpop.permute.xlu0 %397 }
 0x439   :  { %v401_v27 = vmul.f32 %v400_v24, %v398_v25 }
 0x43b   :  { %v402_v28 = vadd.f32 %v401_v27, %v396_v26 }
 0x43c   :  { %v404_v31 = vpop.permute.xlu0 %403 }
 0x43d   :  { %1454 = vtanh.f32 %v402_v28 }
 0x44a   :  { %v1455_v30 = vpop.eup %1454 }
 0x44b   :  { %v406_v32 = vmul.f32 %v1455_v30, %v404_v31 }
 0x44d   :  { %1257 = vmatmul.mubr.f32.vlgmr.msra.gmra.mxu0 %v406_v32 }
 0x44e   :  { %1295 = vmatpush3.msra.mxu0 %v1551_v1  ;;  %1326 = vmatprep.mubr.msk.f32.mxu0 %vm1524_vm0, %v1523_v0 }
 0x44f   :  { %1296 = vmatprep.subr.mxu0 %v1523_v0 }
 0x450   :  { %1297 = vmatpush3.msra.mxu0 %v1553_v2 }
 0x451   :  { %1298 = vmatprep.subr.mxu0 %v1523_v0 }
 0x452   :  { %1299 = vmatpush3.msra.mxu0 %v1557_v3 }
 0x453   :  { %1300 = vmatprep.subr.mxu0 %v1523_v0 }
 0x454   :  { %1301 = vmatpush3.msra.mxu0 %v1561_v6 }
 0x455   :  { %1302 = vmatprep.subr.mxu0 %v1523_v0 }
 0x456   :  { %1303 = vmatpush3.msra.mxu0 %v1571_v9 }
 0x457   :  { %1304 = vmatprep.subr.mxu0 %v1523_v0 }
 0x458   :  { %1305 = vmatpush3.msra.mxu0 %v1575_v10 }
 0x459   :  { %1306 = vmatprep.subr.mxu0 %v1523_v0 }
 0x45a   :  { %1307 = vmatpush3.msra.mxu0 %v1580_v11 }
 0x45b   :  { %1308 = vmatprep.subr.mxu0 %v1523_v0 }
 0x45c   :  { %1309 = vmatpush3.msra.mxu0 %v1586_v12 }
 0x45d   :  { %1310 = vmatprep.subr.mxu0 %v1523_v0 }
 0x45e   :  { %1311 = vmatpush3.msra.mxu0 %v1592_v13 }
 0x45f   :  { %1312 = vmatprep.subr.mxu0 %v1523_v0 }
 0x460   :  { %1313 = vmatpush3.msra.mxu0 %v1598_v14 }
 0x461   :  { %1314 = vmatprep.subr.mxu0 %v1523_v0 }
 0x462   :  { %1315 = vmatpush3.msra.mxu0 %v1604_v15 }
 0x463   :  { %1316 = vmatprep.subr.mxu0 %v1523_v0 }
 0x464   :  { %1317 = vmatpush3.msra.mxu0 %v1610_v16 }
 0x465   :  { %1318 = vmatprep.subr.mxu0 %v1523_v0 }
 0x466   :  { %1319 = vmatpush3.msra.mxu0 %v1616_v17 }
 0x467   :  { %1320 = vmatprep.subr.mxu0 %v1523_v0 }
 0x468   :  { %1321 = vmatpush3.msra.mxu0 %v1622_v18 }
 0x469   :  { %1322 = vmatprep.subr.mxu0 %v1523_v0 }
 0x46a   :  { %1323 = vmatpush3.msra.mxu0 %v1628_v19 }
 0x46b   :  { %1324 = vmatprep.subr.mxu0 %v1523_v0 }
 0x46c   :  { %1325 = vmatpush3.msra.mxu0 %v1634_v20 }
 0x46d   :  { %1364 = vmatprep.subr.mxu0 %v1523_v0 }
 0x50d   :  { %v474_v34 = vpop.f32.mrf.mxu0 }
 0x50e   :  { %v478_v35 = vadd.f32 %v474_v34, %v407_v33 }
 0x50f   :  { %v1258_v37 = vpop.f32.mrf.mxu0 }
 0x510   :  { %v479_v38 = vmul.f32 %v478_v35, %v1691_v29  ;;  %v857_v37 = vld [vmem:[#allocation3 + $0xf8] sm:$0xff] }
 0x512   :  { %1456 = vtanh.f32 %v479_v38  ;;  %v856_v38 = vld [vmem:[#allocation3 + $0xf0] sm:$0xff] }
 0x51f   :  { %v1457_v39 = vpop.eup %1456 }
 0x520   :  { %v481_v40 = vmul.f32 %v1457_v39, %v1691_v29  ;;  %v855_v39 = vld [vmem:[#allocation3 + $0xe8] sm:$0xff] }
 0x522   :  { %v482_v41 = vadd.f32 %v481_v40, %v1694_v36  ;;  %v854_v40 = vld [vmem:[#allocation3 + $0xe0] sm:$0xff] }
 0x524   :  { %486 = vrot.lane.b32.xlu0 %v482_v41, %s1528_s20  ;;  %484 = vrot.lane.b32.xlu1 %v482_v41, %s1527_s19  ;;  %v483_v44 = vmul.f32 %v482_v41, %v402_v28 }
 0x528   :  { %490 = vrot.lane.b32.xlu1 %v482_v41, %s1526_s0  ;;  %v853_v41 = vld [vmem:[#allocation3 + $0xd8] sm:$0xff] }
 0x596   :  { %v487_v42 = vpop.permute.xlu0 %486  ;;  %v485_v43 = vpop.permute.xlu1 %484 }
 0x597   :  { %v488_v45 = vmul.f32 %v487_v42, %v485_v43  ;;  %v852_v42 = vld [vmem:[#allocation3 + $0xd0] sm:$0xff]  ;;  %v755_v43 = vld [vmem:[#allocation2 + $0xe] sm:$0x3] }
 0x599   :  { %v489_v46 = vadd.f32 %v488_v45, %v483_v44 }
 0x59a   :  { %v491_v48 = vpop.permute.xlu1 %490 }
 0x59b   :  { %1458 = vtanh.f32 %v489_v46 }
 0x5a8   :  { %v1459_v47 = vpop.eup %1458 }
 0x5a9   :  { %v493_v49 = vmul.f32 %v1459_v47, %v491_v48  ;;  %v851_v48 = vld [vmem:[#allocation3 + $0xc8] sm:$0xff] }
 0x5ab   :  { %1292 = vmatmul.mubr.f32.vlgmr.msra.gmra.mxu1 %v493_v49  ;;  %v850_v49 = vld [vmem:[#allocation3 + $0xc0] sm:$0xff] }
 0x5ac   :  { %1330 = vmatpush3.msra.mxu1 %v1551_v1  ;;  %1361 = vmatprep.mubr.msk.f32.mxu1 %vm1524_vm0, %v1523_v0 }
 0x5ad   :  { %1331 = vmatprep.subr.mxu1 %v1523_v0 }
 0x5ae   :  { %1332 = vmatpush3.msra.mxu1 %v1553_v2 }
 0x5af   :  { %1333 = vmatprep.subr.mxu1 %v1523_v0 }
 0x5b0   :  { %1334 = vmatpush3.msra.mxu1 %v1557_v3 }
 0x5b1   :  { %1335 = vmatprep.subr.mxu1 %v1523_v0 }
 0x5b2   :  { %1336 = vmatpush3.msra.mxu1 %v1561_v6 }
 0x5b3   :  { %1337 = vmatprep.subr.mxu1 %v1523_v0 }
 0x5b4   :  { %1338 = vmatpush3.msra.mxu1 %v1571_v9 }
 0x5b5   :  { %1339 = vmatprep.subr.mxu1 %v1523_v0 }
 0x5b6   :  { %1340 = vmatpush3.msra.mxu1 %v1575_v10 }
 0x5b7   :  { %1341 = vmatprep.subr.mxu1 %v1523_v0 }
 0x5b8   :  { %1342 = vmatpush3.msra.mxu1 %v1580_v11 }
 0x5b9   :  { %1343 = vmatprep.subr.mxu1 %v1523_v0 }
 0x5ba   :  { %1344 = vmatpush3.msra.mxu1 %v1586_v12 }
 0x5bb   :  { %1345 = vmatprep.subr.mxu1 %v1523_v0 }
 0x5bc   :  { %1346 = vmatpush3.msra.mxu1 %v1592_v13 }
 0x5bd   :  { %1347 = vmatprep.subr.mxu1 %v1523_v0 }
 0x5be   :  { %1348 = vmatpush3.msra.mxu1 %v1598_v14 }
 0x5bf   :  { %1349 = vmatprep.subr.mxu1 %v1523_v0 }
 0x5c0   :  { %1350 = vmatpush3.msra.mxu1 %v1604_v15 }
 0x5c1   :  { %1351 = vmatprep.subr.mxu1 %v1523_v0 }
 0x5c2   :  { %1352 = vmatpush3.msra.mxu1 %v1610_v16 }
 0x5c3   :  { %1353 = vmatprep.subr.mxu1 %v1523_v0 }
 0x5c4   :  { %1354 = vmatpush3.msra.mxu1 %v1616_v17 }
 0x5c5   :  { %1355 = vmatprep.subr.mxu1 %v1523_v0 }
 0x5c6   :  { %1356 = vmatpush3.msra.mxu1 %v1622_v18 }
 0x5c7   :  { %1357 = vmatprep.subr.mxu1 %v1523_v0 }
 0x5c8   :  { %1358 = vmatpush3.msra.mxu1 %v1628_v19 }
 0x5c9   :  { %1359 = vmatprep.subr.mxu1 %v1523_v0 }
 0x5ca   :  { %1360 = vmatpush3.msra.mxu1 %v1634_v20 }
 0x5cb   :  { %1399 = vmatprep.subr.mxu1 %v1523_v0 }
 0x66b   :  { %v561_v51 = vpop.f32.mrf.mxu1 }
 0x66c   :  { %v565_v52 = vadd.f32 %v561_v51, %v494_v50  ;;  %v849_v50 = vld [vmem:[#allocation3 + $0xb8] sm:$0xff]  ;;  %v848_v51 = vld [vmem:[#allocation3 + $0xb0] sm:$0xff] }
 0x66d   :  { %v1293_v53 = vpop.f32.mrf.mxu1 }
 0x66e   :  { %v566_v54 = vmul.f32 %v565_v52, %v1691_v29  ;;  %v847_v53 = vld [vmem:[#allocation3 + $0xa8] sm:$0xff] }
 0x670   :  { %1460 = vtanh.f32 %v566_v54 }
 0x67d   :  { %v1461_v55 = vpop.eup %1460 }
 0x67e   :  { %v568_v56 = vmul.f32 %v1461_v55, %v1691_v29  ;;  %v846_v55 = vld [vmem:[#allocation3 + $0xa0] sm:$0xff] }
 0x680   :  { %v569_v57 = vadd.f32 %v568_v56, %v1694_v36 }
 0x682   :  { %573 = vrot.lane.b32.xlu1 %v569_v57, %s1528_s20  ;;  %571 = vrot.lane.b32.xlu0 %v569_v57, %s1527_s19  ;;  %v570_v60 = vmul.f32 %v569_v57, %v489_v46 }
 0x686   :  { %577 = vrot.lane.b32.xlu0 %v569_v57, %s1526_s0  ;;  %v845_v57 = vld [vmem:[#allocation3 + $0x98] sm:$0xff] }
 0x6f4   :  { %v574_v58 = vpop.permute.xlu1 %573  ;;  %v572_v59 = vpop.permute.xlu0 %571 }
 0x6f5   :  { %v575_v61 = vmul.f32 %v574_v58, %v572_v59  ;;  %v844_v58 = vld [vmem:[#allocation3 + $0x90] sm:$0xff] }
 0x6f7   :  { %v576_v62 = vadd.f32 %v575_v61, %v570_v60 }
 0x6f8   :  { %v578_v4 = vpop.permute.xlu0 %577 }
 0x6f9   :  { %1462 = vtanh.f32 %v576_v62 }
 0x706   :  { %v1463_v63 = vpop.eup %1462 }
 0x707   :  { %v580_v5 = vmul.f32 %v1463_v63, %v578_v4 }
 0x709   :  { %1327 = vmatmul.mubr.f32.vlgmr.msra.gmra.mxu0 %v580_v5 }
 0x70a   :  { %1365 = vmatpush3.msra.mxu0 %v1551_v1  ;;  %1396 = vmatprep.mubr.msk.f32.mxu0 %vm1524_vm0, %v1523_v0  ;;  %v581_v1 = vld [vmem:[#allocation2 + $0xa] sm:$0x3] }
 0x70b   :  { %1366 = vmatprep.subr.mxu0 %v1523_v0 }
 0x70c   :  { %1367 = vmatpush3.msra.mxu0 %v1553_v2 }
 0x70d   :  { %1368 = vmatprep.subr.mxu0 %v1523_v0 }
 0x70e   :  { %1369 = vmatpush3.msra.mxu0 %v1557_v3 }
 0x70f   :  { %1370 = vmatprep.subr.mxu0 %v1523_v0 }
 0x710   :  { %1371 = vmatpush3.msra.mxu0 %v1561_v6 }
 0x711   :  { %1372 = vmatprep.subr.mxu0 %v1523_v0 }
 0x712   :  { %1373 = vmatpush3.msra.mxu0 %v1571_v9 }
 0x713   :  { %1374 = vmatprep.subr.mxu0 %v1523_v0 }
 0x714   :  { %1375 = vmatpush3.msra.mxu0 %v1575_v10 }
 0x715   :  { %1376 = vmatprep.subr.mxu0 %v1523_v0 }
 0x716   :  { %1377 = vmatpush3.msra.mxu0 %v1580_v11 }
 0x717   :  { %1378 = vmatprep.subr.mxu0 %v1523_v0 }
 0x718   :  { %1379 = vmatpush3.msra.mxu0 %v1586_v12 }
 0x719   :  { %1380 = vmatprep.subr.mxu0 %v1523_v0 }
 0x71a   :  { %1381 = vmatpush3.msra.mxu0 %v1592_v13 }
 0x71b   :  { %1382 = vmatprep.subr.mxu0 %v1523_v0 }
 0x71c   :  { %1383 = vmatpush3.msra.mxu0 %v1598_v14 }
 0x71d   :  { %1384 = vmatprep.subr.mxu0 %v1523_v0 }
 0x71e   :  { %1385 = vmatpush3.msra.mxu0 %v1604_v15 }
 0x71f   :  { %1386 = vmatprep.subr.mxu0 %v1523_v0 }
 0x720   :  { %1387 = vmatpush3.msra.mxu0 %v1610_v16 }
 0x721   :  { %1388 = vmatprep.subr.mxu0 %v1523_v0 }
 0x722   :  { %1389 = vmatpush3.msra.mxu0 %v1616_v17 }
 0x723   :  { %1390 = vmatprep.subr.mxu0 %v1523_v0 }
 0x724   :  { %1391 = vmatpush3.msra.mxu0 %v1622_v18 }
 0x725   :  { %1392 = vmatprep.subr.mxu0 %v1523_v0 }
 0x726   :  { %1393 = vmatpush3.msra.mxu0 %v1628_v19 }
 0x727   :  { %1394 = vmatprep.subr.mxu0 %v1523_v0 }
 0x728   :  { %1395 = vmatpush3.msra.mxu0 %v1634_v20 }
 0x7c9   :  { %v648_v2 = vpop.f32.mrf.mxu0 }
 0x7ca   :  { %v652_v3 = vadd.f32 %v648_v2, %v581_v1  ;;  %v954_v2 = vld [vmem:[#allocation3 + $0x10b] ss:$0 sm:$0xff] }
 0x7cb   :  { %v1328_v6 = vpop.f32.mrf.mxu0 }
 0x7cc   :  { %v653_v9 = vmul.f32 %v652_v3, %v1691_v29 }
 0x7ce   :  { %1464 = vtanh.f32 %v653_v9 }
 0x7db   :  { %v1465_v10 = vpop.eup %1464 }
 0x7dc   :  { %v655_v11 = vmul.f32 %v1465_v10, %v1691_v29 }
 0x7de   :  { %v656_v12 = vadd.f32 %v655_v11, %v1694_v36 }
 0x7e0   :  { %660 = vrot.lane.b32.xlu0 %v656_v12, %s1528_s20  ;;  %658 = vrot.lane.b32.xlu1 %v656_v12, %s1527_s19  ;;  %v657_v15 = vmul.f32 %v656_v12, %v576_v62 }
 0x7e4   :  { %664 = vrot.lane.b32.xlu1 %v656_v12, %s1526_s0 }
 0x852   :  { %v661_v13 = vpop.permute.xlu0 %660  ;;  %v659_v14 = vpop.permute.xlu1 %658 }
 0x853   :  { %v662_v16 = vmul.f32 %v661_v13, %v659_v14 }
 0x855   :  { %v663_v17 = vadd.f32 %v662_v16, %v657_v15 }
 0x856   :  { %v665_v19 = vpop.permute.xlu1 %664 }
 0x857   :  { %1466 = vtanh.f32 %v663_v17 }
 0x864   :  { %v1467_v18 = vpop.eup %1466 }
 0x865   :  { %v667_v20 = vmul.f32 %v1467_v18, %v665_v19 }
 0x867   :  { %1362 = vmatmul.mubr.f32.vlgmr.msra.gmra.mxu1 %v667_v20 }
 0x868   :  { %1431 = vmatprep.mubr.msk.f32.mxu1 %vm1524_vm0, %v1523_v0  ;;  %1400 = vmatpush3.msra.mxu1 %v857_v37 }
 0x869   :  { %1401 = vmatprep.subr.mxu1 %v1523_v0 }
 0x86a   :  { %1402 = vmatpush3.msra.mxu1 %v856_v38 }
 0x86b   :  { %1403 = vmatprep.subr.mxu1 %v1523_v0 }
 0x86c   :  { %1404 = vmatpush3.msra.mxu1 %v855_v39 }
 0x86d   :  { %1405 = vmatprep.subr.mxu1 %v1523_v0 }
 0x86e   :  { %1406 = vmatpush3.msra.mxu1 %v854_v40 }
 0x86f   :  { %1407 = vmatprep.subr.mxu1 %v1523_v0 }
 0x870   :  { %1408 = vmatpush3.msra.mxu1 %v853_v41 }
 0x871   :  { %1409 = vmatprep.subr.mxu1 %v1523_v0 }
 0x872   :  { %1410 = vmatpush3.msra.mxu1 %v852_v42 }
 0x873   :  { %1411 = vmatprep.subr.mxu1 %v1523_v0 }
 0x874   :  { %1412 = vmatpush3.msra.mxu1 %v851_v48 }
 0x875   :  { %1413 = vmatprep.subr.mxu1 %v1523_v0 }
 0x876   :  { %1414 = vmatpush3.msra.mxu1 %v850_v49 }
 0x877   :  { %1415 = vmatprep.subr.mxu1 %v1523_v0 }
 0x878   :  { %1416 = vmatpush3.msra.mxu1 %v849_v50 }
 0x879   :  { %1417 = vmatprep.subr.mxu1 %v1523_v0 }
 0x87a   :  { %1418 = vmatpush3.msra.mxu1 %v848_v51 }
 0x87b   :  { %1419 = vmatprep.subr.mxu1 %v1523_v0 }
 0x87c   :  { %1420 = vmatpush3.msra.mxu1 %v847_v53 }
 0x87d   :  { %1421 = vmatprep.subr.mxu1 %v1523_v0 }
 0x87e   :  { %1422 = vmatpush3.msra.mxu1 %v846_v55 }
 0x87f   :  { %1423 = vmatprep.subr.mxu1 %v1523_v0 }
 0x880   :  { %1424 = vmatpush3.msra.mxu1 %v845_v57 }
 0x881   :  { %1425 = vmatprep.subr.mxu1 %v1523_v0 }
 0x882   :  { %1426 = vmatpush3.msra.mxu1 %v844_v58 }
 0x883   :  { %1427 = vmatprep.subr.mxu1 %v1523_v0 }
 0x927   :  { %v735_v8 = vpop.f32.mrf.mxu1 }
 0x928   :  { %v739_v21 = vadd.f32 %v735_v8, %v668_v7 }
 0x929   :  { %v1363_v22 = vpop.f32.mrf.mxu1 }
 0x92a   :  { %v740_v23 = vmul.f32 %v739_v21, %v1691_v29 }
 0x92c   :  { %1468 = vtanh.f32 %v740_v23 }
 0x939   :  { %v1469_v24 = vpop.eup %1468 }
 0x93a   :  { %v742_v25 = vmul.f32 %v1469_v24, %v1691_v29 }
 0x93c   :  { %v743_v26 = vadd.f32 %v742_v25, %v1694_v36 }
 0x93e   :  { %747 = vrot.lane.b32.xlu1 %v743_v26, %s1528_s20  ;;  %745 = vrot.lane.b32.xlu0 %v743_v26, %s1527_s19  ;;  %v744_v30 = vmul.f32 %v743_v26, %v663_v17 }
 0x942   :  { %751 = vrot.lane.b32.xlu0 %v743_v26, %s1526_s0 }
 0x9b0   :  { %v748_v27 = vpop.permute.xlu1 %747  ;;  %v746_v28 = vpop.permute.xlu0 %745 }
 0x9b1   :  { %v749_v31 = vmul.f32 %v748_v27, %v746_v28 }
 0x9b3   :  { %v1908_v32 = vadd.f32 %v749_v31, %v744_v30 }
 0x9b4   :  { %v752_v34 = vpop.permute.xlu0 %751 }
 0x9b5   :  { %1470 = vtanh.f32 %v1908_v32 }
 0x9c2   :  { %v1471_v33 = vpop.eup %1470 }
 0x9c3   :  { %v754_v35 = vmul.f32 %v1471_v33, %v752_v34 }
 0x9c5   :  { %1397 = vmatmul.mubr.f32.vlgmr.msra.gmra.mxu0 %v754_v35 }
 0xa85   :  { %v822_v44 = vpop.f32.mrf.mxu0 }
 0xa86   :  { %v826_v45 = vadd.f32 %v822_v44, %v755_v43 }
 0xa87   :  { %v1398_v46 = vpop.f32.mrf.mxu0 }
 0xa88   :  { %v827_v47 = vmul.f32 %v826_v45, %v1691_v29 }
 0xa8a   :  { %1472 = vtanh.f32 %v827_v47 }
 0xa97   :  { %v1473_v52 = vpop.eup %1472 }
 0xa98   :  { %v829_v54 = vmul.f32 %v1473_v52, %v1691_v29  ;;  %v843_v29 = vld [vmem:[#allocation3 + $0x88] sm:$0xff] }
 0xa99   :  { %1428 = vmatpush3.msra.mxu1 %v843_v29 }
 0xa9a   :  { %v830_v56 = vadd.f32 %v829_v54, %v1694_v36  ;;  %v842_v36 = vld [vmem:[#allocation3 + $0x80] sm:$0xff]  ;;  %1429 = vmatprep.subr.mxu1 %v1523_v0 }
 0xa9b   :  { %1430 = vmatpush3.msra.mxu1 %v842_v36 }
 0xa9c   :  { %834 = vrot.lane.b32.xlu0 %v830_v56, %s1528_s20  ;;  %832 = vrot.lane.b32.xlu1 %v830_v56, %s1527_s19  ;;  %v831_v61 = vmul.f32 %v830_v56, %v1908_v32 }
 0xaa0   :  { %838 = vrot.lane.b32.xlu1 %v830_v56, %s1526_s0 }
 0xb0e   :  { %v835_v59 = vpop.permute.xlu0 %834  ;;  %v833_v60 = vpop.permute.xlu1 %832 }
 0xb0f   :  { %v836_v62 = vmul.f32 %v835_v59, %v833_v60 }
 0xb11   :  { %v837_v63 = vadd.f32 %v836_v62, %v831_v61 }
 0xb12   :  { %v839_v5 = vpop.permute.xlu1 %838 }
 0xb13   :  { %1474 = vtanh.f32 %v837_v63 }
 0xb20   :  { %v1475_v4 = vpop.eup %1474 }
 0xb21   :  { %v841_v1 = vmul.f32 %v1475_v4, %v839_v5 }
 0xb23   :  { %1432 = vmatmul.mubr.f32.vlgmr.msra.gmra.mxu1 %v841_v1 }
 0xbe3   :  { %v929_v3 = vpop.f32.mrf.mxu1 }
 0xbe4   :  { %v930_v6 = vadd.f32 %v954_v2, %v929_v3 }
 0xbe5   :  { %v1433_v0 = vpop.f32.mrf.mxu1 }
 0xbe6   :  { %934 = vst.msk [vmem:[#allocation6] sm:$0x3] %vm933_vm6, %v930_v6 }
 0xbe7   :  { %1507 = shalt.err (!%p1504_p9)
}
 0xbe8   :  { %944 = dma.vmem_to_hbm [thread:$0]  %s942_s22, 32, %s1938_s2, [#allocation5]  }
 0xbe9   :  { %1518 = dma.done.wait [#allocation5], 32  }
 0xbea   :  { %1519 = vsyncadd [#allocation5], 4294967264 }
 0xbeb   :  { %948 = vsyncpa [#allocation4], 1 }
 0xbec   :  { %949 = vsyncpa [#allocation5], 1 }

</bundles_post_ra>
